<compile_context>
chip_gen: v7x
topology: tpu7x:2x2x1
jax: 0.10.0
libtpu: 0.0.40
codegen_flags: <defaults>
</compile_context>

<pallas_src>
import jax
import jax.numpy as jnp
import numpy as np
from jax.experimental import pallas as pl
from jax.experimental.pallas import tpu as pltpu


def _make_segment_kernel(end_point: float):
    """Build the kernel with `end_point` closed over as a compile-time constant.

    The abstract base does not use end_point; a concrete subclass's schedule
    math would reference `end_point` / `inv_end_point` here directly as Python
    floats (multiply-by-inverse instead of divide), keeping them out of the
    operand list entirely.
    """
    inv_end_point = 1.0 / float(end_point)  # for subclass use; free closure constant
    del inv_end_point  # unused by the abstract base class

    def kernel(progress_ref, out_ref):
        # Whole-vreg VPU path (lane-dense tile).  Identity placeholder:
        # a concrete subclass replaces this with its schedule math.
        out_ref[...] = progress_ref[...]

    return kernel


def weight_schedule_segment_forward(progress: jax.Array, end_point: float,
                                    *, block_rows: int = 8) -> jax.Array:
    """Pallas wrapper mirroring WeightScheduleSegment.forward(progress).

    * 0-d `progress`: returns it directly (no kernel — zero overhead beats any
      launch cost for a 4-byte identity).
    * 2-d `progress` (rows % block_rows == 0, cols % 128 == 0): batched,
      lane-dense evaluation — the contract concrete subclasses should use.
    """
    progress = jnp.asarray(progress)

    if progress.ndim == 0:
        # Abstract base class: identity.  No pallas_call for a scalar.
        return progress

    if progress.ndim != 2:
        raise ValueError("batched progress must be 2-D (rows, cols)")
    rows, cols = progress.shape
    if rows % block_rows != 0 or cols % 128 != 0:
        raise ValueError("progress tile must be lane-dense: rows % block_rows == 0, cols % 128 == 0")

    progress_f32 = progress.astype(jnp.float32)
    n_elems = rows * cols
    grid = (rows // block_rows,)

    out = pl.pallas_call(
        _make_segment_kernel(end_point),
        out_shape=jax.ShapeDtypeStruct((rows, cols), jnp.float32),
        grid_spec=pltpu.PrefetchScalarGridSpec(
            num_scalar_prefetch=0,
            grid=grid,
            in_specs=[pl.BlockSpec((block_rows, cols), lambda i: (i, 0))],
            out_specs=pl.BlockSpec((block_rows, cols), lambda i: (i, 0)),
        ),
        compiler_params=pltpu.CompilerParams(
            dimension_semantics=("parallel",),  # shards across TCs on v7x; neutral elsewhere
        ),
        cost_estimate=pl.CostEstimate(
            flops=n_elems, transcendentals=0, bytes_accessed=2 * 4 * n_elems),
        input_output_aliases={0: 0},  # identity placeholder: alias, don't allocate
    )(progress_f32)

    return out


if __name__ == "__main__":
    key = jax.random.PRNGKey(0)
    end_point = 0.75  # module __init__ constant

    # --- scalar path (matches the PyTorch forward(progress: float) signature) ---
    k0, k1 = jax.random.split(key)
    progress_scalar = jax.random.uniform(k0, (), dtype=jnp.float32)
    out_scalar = jax.block_until_ready(
        weight_schedule_segment_forward(progress_scalar, end_point))
    assert jnp.allclose(out_scalar, progress_scalar), (out_scalar, progress_scalar)

    # --- batched, lane-dense path (contract for concrete subclasses) ---
    progress_batch = jax.random.uniform(k1, (16, 512), dtype=jnp.float32)
    expected = np.asarray(jax.device_get(progress_batch))  # host copy before aliasing
    out_batch = jax.block_until_ready(
        weight_schedule_segment_forward(progress_batch, end_point))

    # Abstract base class forward is an identity placeholder here.
    assert out_batch.shape == (16, 512) and out_batch.dtype == jnp.float32
    np.testing.assert_allclose(np.asarray(jax.device_get(out_batch)), expected, rtol=0, atol=0)

    print("KERNEL_OK")
</pallas_src>

<mosaic_0001>
module attributes {stable_mosaic.version = 11 : i64} {
  func.func @kernel(%arg0: i32, %arg1: memref<8x512xf32, #tpu.memory_space<vmem>>, %arg2: memref<8x512xf32, #tpu.memory_space<vmem>>) attributes {dimension_semantics = [#tpu.dimension_semantics<parallel>], iteration_bounds = array<i64: 2>, scalar_prefetch = 0 : i64, scratch_operands = 0 : i64, tpu.core_type = #tpu.core_type<tc>, window_params = [{transform_indices = @transform_0, window_bounds = array<i64: 8, 512>}, {transform_indices = @transform_1, window_bounds = array<i64: 8, 512>}]} {
    %c0 = arith.constant 0 : index
    %c0_0 = arith.constant 0 : index
    %0 = vector.load %arg1[%c0, %c0_0] : memref<8x512xf32, #tpu.memory_space<vmem>>, vector<8x512xf32>
    %c0_1 = arith.constant 0 : index
    %c0_2 = arith.constant 0 : index
    %1 = vector.load %arg2[%c0_1, %c0_2] : memref<8x512xf32, #tpu.memory_space<vmem>>, vector<8x512xf32>
    tpu.vector_store %arg2[%c0_1, %c0_2], %0 {strides = array<i32>} : memref<8x512xf32, #tpu.memory_space<vmem>>, vector<8x512xf32>,
    return
  }
  func.func @transform_0(%arg0: i32) -> (i32, i32) {
    %c0_i32 = arith.constant 0 : i32
    %c0_i32_0 = arith.constant 0 : i32
    return %arg0, %c0_i32 : i32, i32
  }
  func.func @transform_1(%arg0: i32) -> (i32, i32) {
    %c0_i32 = arith.constant 0 : i32
    %c0_i32_0 = arith.constant 0 : i32
    return %arg0, %c0_i32 : i32, i32
  }
}

</mosaic_0001>

<bundles_post_ra>
// kernel: tpu_custom_call.1
= control target key start
LH: loop header
LB: loop body
LE: loop exit
PB: predicated region body
PF: predicated region fallthrough
CT: control target
= control target key end

     0   :  { %6 = vsyncpa [#allocation3], 0  ;;  %s559_s0 = inlined_call_operand.hbm [shape: f32[16,512], index: 0, kind: input, shape index: {}, may-alias: {0,1}]   ;;  %s560_s1 = inlined_call_operand.hbm [shape: f32[16,512], index: 1, kind: output, shape index: {}, may-alias: {0,1}]  }
   0x1   :  { %8 = vsyncpa [#allocation3 + $0x1], 0 }
   0x2   :  { %9 = vsyncpa [#allocation4], 0 }
   0x3   :  { %11 = vsyncpa [#allocation4 + $0x1], 0  ;;  %s398_s6 = smov 0   ;;  %s400_s7 = smov 0  }
   0x4   :  { %s402_s8 = smov 0   ;;  %s404_s9 = smov 0  }
   0x5 LB: > { %s419_s10 = sadd.s32 4294967295, %s384_s9   ;;  %s226_s11 = sadd.s32 4294967294, %s384_s9   ;;  %s384_s9 = sphi %s404_s9, %s575_s9   ;;  %s380_s8 = sphi %s402_s8, %s574_s8   ;;  %s376_s7 = sphi %s400_s7, %s573_s7   ;;  %s372_s6 = sphi %s398_s6, %s572_s6  }
   0x6   : > { %s423_s12 = sadd.s32 1, %s384_s9   ;;  %s24_s13 = sadd.s32 1, %s380_s8 }
   0x7   : > { %s21_s14 = ssub.s32 %s384_s9, %s423_s12  ;;  %p31_p0 = scmp.ne.s32.totalorder %s380_s8, %s376_s7 }
   0x8   : > { %p22_p1 = scmp.eq.s32.totalorder %s21_s14, 0  ;;  %p32_p2 = scmp.eq.s32.totalorder %s384_s9, 0 }
   0x9   : > { %p37_p3 = scmp.ne.s32.totalorder %s376_s7, %s372_s6  ;;  %p38_p4 = scmp.eq.s32.totalorder %s419_s10, 0 }
   0xa   : > { %s435_s15 = scalar_select %p22_p1, %s380_s8, %s24_s13  }
   0xb   : > { %p437_p5 = por %p32_p2, %p31_p0  ;;  %p441_p6 = por %p38_p4, %p37_p3 }
   0xc   : > { %p61_p7 = scmp.eq.s32.totalorder %s419_s10, 1  ;;  %p67_p8 = scmp.eq.s32.totalorder %s226_s11, 1 }
   0xd   : > { %p254_p10 = scmp.lt.s32.totalorder %s384_s9, 2  ;;  %s87_s20 = sand.u32 1, %s380_s8  }
   0xe   : > { %p448_p11 = por %p61_p7, %p31_p0  ;;  %p452_p12 = por %p67_p8, %p37_p3 }
   0xf   : > { %s240_s21 = sshll.u32 %s384_s9, 9  ;;  %s229_s22 = sshll.u32 %s87_s20, 5 }
  0x10   : > { %s564_s18 = scalar_select %p448_p11, 1, 0 }
  0x11   : > { %s565_s19 = scalar_select %p452_p12, 1, 0 }
  0x12   : > { %s461_s25 = scalar_lea.hbm %s559_s0, %s240_s21  ;;  %s91_s26 = scalar_lea.vmem [#allocation2], %s229_s22 }
  0x13   : > { %s99_s27 = sshll.u32 %s91_s26, 4  ;;  %p465_p13 = pnand %p254_p10, %p437_p5  ;;  %s469_s27 = int_to_ptr.vmem [resolvable:$true] %s99_s27 }
  0x14   : > { %s88_s29 = scalar_lea.sflag [#allocation3], %s87_s20  ;;  %s288_s30 = scalar_lea.hbm %s461_s25, 512 }
  0x15   : > { %p289_p2 = scmp.ne.s32.totalorder %s461_s25, %s288_s30  ;;  %p290_p3 = pneg %p465_p13 }
  0x16   : > { %s293_s4 = scalar_lea.hbm %s559_s0, 1024  ;;  %p294_p5 = scmp.lt.u32.totalorder %s461_s25, %s559_s0 }
  0x17   : > { %p291_p4 = pnand %p290_p3, %p289_p2  ;;  %p295_p8 = scmp.lt.u32.totalorder %s293_s4, %s288_s30 }
  0x18   : > { %p297_p9 = scmp.lt.u32.totalorder %s288_s30, %s461_s25 }
  0x19   : > { %p292_p7 = pneg %p291_p4  ;;  %p296_p10 = por %p295_p8, %p294_p5 }
  0x1b   : > { %p298_p0 = por %p297_p9, %p296_p10 }
  0x1d   : > { %p299_p1 = pnand %p298_p0, %p292_p7 }
  0x1f   : > { %302 = shalt.err (!%p299_p1)
}
  0x20   : > { %s303_s13 = scalar_lea.vmem %s469_s27, 512  ;;  %s386_s14 = smov [#allocation2]  }
  0x21   : > { %p304_p2 = scmp.ne.s32.totalorder %s469_s27, %s303_s13  ;;  %s308_s16 = sshll.u32 %s386_s14, 4  ;;  %s309_s16 = int_to_ptr.vmem [resolvable:$false] %s308_s16 }
  0x22   : > { %s310_s20 = scalar_lea.vmem %s309_s16, 1024  ;;  %p311_p11 = scmp.lt.s32.totalorder %s469_s27, %s309_s16 }
  0x23   : > { %p306_p4 = pnand %p304_p2, %p290_p3  ;;  %p312_p5 = scmp.lt.s32.totalorder %s310_s20, %s303_s13 }
  0x25   : > { %p307_p12 = pneg %p306_p4  ;;  %p313_p8 = por %p312_p5, %p311_p11 }
  0x27   : > { %p314_p9 = pnand %p313_p8, %p307_p12 }
  0x29   : > { %317 = shalt.err (!%p314_p9)
}
  0x2a   : > { %249 = dma.hbm_to_vmem [thread:$0]  (!%p465_p13), %s461_s25, 512, %s469_s27, %s88_s29  }
  0x2b   : > { %p567_p0 = scmp.lt.s32.totalorder %s384_s9, 3  ;;  %p568_p1 = scmp.ge.s32.totalorder %s384_s9, 1 }
  0x2d   : > { %p105_p3 = pnand %p568_p1, %p567_p0 }
  0x2e   : > { %s503_s21 = sand.u32 (!%p105_p3), 1, %s376_s7  }
  0x2f   : > { %108 = sbr.rel (%p105_p3) target bundleno = 81 (0x51), region = 24  ;;  %s233_s22 = sshll.u32 (!%p105_p3), %s503_s21, 5 }
  0x30   : > { %s111_s23 = scalar_lea.sflag (!%p105_p3), [#allocation3], %s503_s21  ;;  %s114_s24 = scalar_lea.vmem (!%p105_p3), [#allocation2], %s233_s22 }
  0x36   : > { %363 = dma.done.wait (%p441_p6), %s111_s23, 512  }
  0x37   : > { %365 = vsyncadd (%p441_p6), %s111_s23, 4294966784  ;;  %s132_s25 = scalar_lea.vmem [#allocation5], %s233_s22  ;;  %s241_s27 = sshll.u32 %s419_s10, 9  ;;  %v133_v0 = vld [vmem:[%s114_s24] sm:$0xff]  ;;  %v134_v1 = vld [vmem:[%s114_s24 + $0x8] sm:$0xff] }
  0x38   : > { %s156_s26 = sshll.u32 %s132_s25, 4  ;;  %v135_v2 = vld [vmem:[%s114_s24 + $0x10] sm:$0xff]  ;;  %s517_s30 = scalar_lea.hbm %s560_s1, %s241_s27  ;;  %137 = vst [vmem:[%s132_s25] sm:$0xff] %v133_v0  ;;  %138 = vst [vmem:[%s132_s25 + $0x8] sm:$0xff] %v134_v1  ;;  %v136_v3 = vld [vmem:[%s114_s24 + $0x18] sm:$0xff]  ;;  %s512_s26 = int_to_ptr.vmem [resolvable:$true] %s156_s26 }
  0x39   : > { %139 = vst [vmem:[%s132_s25 + $0x10] sm:$0xff] %v135_v2  ;;  %140 = vst [vmem:[%s132_s25 + $0x18] sm:$0xff] %v136_v3  ;;  %s142_s17 = scalar_lea.sflag [#allocation4], %s503_s21  ;;  %s318_s10 = scalar_lea.vmem %s512_s26, 512 }
  0x3a   : > { %p319_p6 = scmp.ne.s32.totalorder %s512_s26, %s318_s10  ;;  %p569_p11 = scmp.ne.s32.totalorder %s564_s18, 0 }
  0x3b   : > { %s387_s2 = smov [#allocation5]  }
  0x3c   : > { %p320_p12 = pnand %p319_p6, %p569_p11  ;;  %s322_s3 = sshll.u32 %s387_s2, 4  ;;  %s323_s3 = int_to_ptr.vmem [resolvable:$false] %s322_s3 }
  0x3d   : > { %s324_s4 = scalar_lea.vmem %s323_s3, 1024  ;;  %p325_p7 = scmp.lt.s32.totalorder %s512_s26, %s323_s3 }
  0x3e   : > { %p321_p13 = pneg %p320_p12  ;;  %p326_p10 = scmp.lt.s32.totalorder %s324_s4, %s318_s10 }
  0x40   : > { %p327_p2 = por %p326_p10, %p325_p7 }
  0x42   : > { %p328_p4 = pnand %p327_p2, %p321_p13 }
  0x44   : > { %331 = shalt.err (!%p328_p4)
}
  0x45   : > { %s332_s5 = scalar_lea.hbm %s517_s30, 512  ;;  %s336_s14 = scalar_lea.hbm %s560_s1, 1024 }
  0x46   : > { %p333_p5 = scmp.ne.s32.totalorder %s517_s30, %s332_s5  ;;  %p337_p0 = scmp.lt.u32.totalorder %s517_s30, %s560_s1 }
  0x47   : > { %p338_p1 = scmp.lt.u32.totalorder %s336_s14, %s332_s5  ;;  %p340_p6 = scmp.lt.u32.totalorder %s332_s5, %s517_s30 }
  0x48   : > { %p334_p8 = pnand %p333_p5, %p569_p11 }
  0x49   : > { %p339_p3 = por %p338_p1, %p337_p0 }
  0x4a   : > { %p335_p9 = pneg %p334_p8 }
  0x4b   : > { %p341_p12 = por %p340_p6, %p339_p3 }
  0x4d   : > { %p342_p13 = pnand %p341_p12, %p335_p9 }
  0x4f   : > { %345 = shalt.err (!%p342_p13)
}
  0x50   : > { %244 = dma.vmem_to_hbm [thread:$0]  (%p569_p11), %s512_s26, 512, %s517_s30, %s142_s17  }
  0x51 PF: > { %s168_s21 = sand.u32 1, %s372_s6   ;;  %p570_p7 = scmp.ne.s32.totalorder %s565_s19, 0 }
  0x52   : > { %p571_p10 = scmp.ge.s32.totalorder %s384_s9, 2  ;;  %s169_s22 = scalar_lea.sflag [#allocation4], %s168_s21 }
  0x54   : > { %p251_p2 = pnand %p571_p10, %p570_p7 }
  0x56   : > { %367 = dma.done.wait (!%p251_p2), %s169_s22, 512  }
  0x57   : > { %369 = vsyncadd (!%p251_p2), %s169_s22, 4294966784  ;;  %p14_p4 = scmp.ge.s32.totalorder %s423_s12, 4   ;;  %s572_s6 = smov %s376_s7 }
  0x58   : > { %s573_s7 = smov %s380_s8  ;;  %s574_s8 = smov %s435_s15 }
  0x59   : > { %s575_s9 = smov %s423_s12  ;;  %16 = sbr.rel (!%p14_p4) target bundleno = 5 (0x5), region = 69 }
  0x60   :  { %174 = vsyncpa [#allocation3], 1 }
  0x61   :  { %176 = vsyncpa [#allocation3 + $0x1], 1 }
  0x62   :  { %177 = vsyncpa [#allocation4], 1 }
  0x63   :  { %179 = vsyncpa [#allocation4 + $0x1], 1 }

</bundles_post_ra>
